<compile_context>
chip_gen: v5e
topology: v5e:2x2
jax: 0.10.0
libtpu: 0.0.40
codegen_flags: <defaults>
</compile_context>

<pallas_src>
import functools
import math

import jax
import jax.numpy as jnp
from jax.experimental import pallas as pl
from jax.experimental.pallas import tpu as pltpu


# ------------------------------ activations ---------------------------------

def _silu(x):
    return x * jax.nn.sigmoid(x)


def _gelu_tanh(x):
    c = math.sqrt(2.0 / math.pi)
    return 0.5 * x * (1.0 + jnp.tanh(c * (x + 0.044715 * x * x * x)))


_ACT2FN = {"silu": _silu, "gelu": _gelu_tanh, "gelu_new": _gelu_tanh}


# -------------------------------- helpers ------------------------------------

def _round_up(n, m):
    return ((n + m - 1) // m) * m


def _pad_rows(x2, rows):
    return x2 if x2.shape[0] == rows else jnp.pad(x2, ((0, rows - x2.shape[0]), (0, 0)))


def _pick_tile_m(M, tile_m):
    tm = min(tile_m, _round_up(M, 8))
    return _round_up(tm, 8)


def _pick_tile_i(I, tile_i):
    req = I if tile_i is None else tile_i
    if I <= req:
        return I
    cand = req - (req % 128)
    while cand >= 128:
        if I % cand == 0:
            return cand
        cand -= 128
    return I


# ------------------------------ RMSNorm kernel -------------------------------

def _rmsnorm_kernel(x_ref, w_ref, o_ref, *, eps):
    x = x_ref[...].astype(jnp.float32)
    inv = jax.lax.rsqrt(jnp.mean(x * x, axis=-1, keepdims=True) + eps)
    o_ref[...] = (x * inv * w_ref[...].astype(jnp.float32)).astype(o_ref.dtype)


def rmsnorm(x2, w, *, eps=1e-5, tile_m=256):
    """x2: [M, D]; w: [D] -> [M, D]."""
    M, D = x2.shape
    tm = _pick_tile_m(M, tile_m)
    Mp = _round_up(M, tm)
    xp = _pad_rows(x2, Mp)
    out = pl.pallas_call(
        functools.partial(_rmsnorm_kernel, eps=eps),
        out_shape=jax.ShapeDtypeStruct((Mp, D), x2.dtype),
        grid_spec=pltpu.PrefetchScalarGridSpec(
            num_scalar_prefetch=0,
            grid=(Mp // tm,),
            in_specs=[pl.BlockSpec((tm, D), lambda i: (i, 0)),
                      pl.BlockSpec((1, D), lambda i: (0, 0))],
            out_specs=pl.BlockSpec((tm, D), lambda i: (i, 0)),
        ),
        compiler_params=pltpu.CompilerParams(dimension_semantics=("parallel",)),
    )(xp, w.reshape(1, D))
    return out[:M]


# ----------------------- residual add + RMSNorm kernel -----------------------

def _add_rmsnorm_kernel(r_ref, d_ref, w_ref, h_ref, y_ref, *, eps):
    h = r_ref[...].astype(jnp.float32) + d_ref[...].astype(jnp.float32)
    h_ref[...] = h.astype(h_ref.dtype)
    inv = jax.lax.rsqrt(jnp.mean(h * h, axis=-1, keepdims=True) + eps)
    y_ref[...] = (h * inv * w_ref[...].astype(jnp.float32)).astype(y_ref.dtype)


def add_rmsnorm(r2, d2, w, *, eps=1e-5, tile_m=256):
    """Fused (residual + mixer_out) and RMSNorm.  Returns (h, rmsnorm(h))."""
    M, D = r2.shape
    tm = _pick_tile_m(M, tile_m)
    Mp = _round_up(M, tm)
    rp = _pad_rows(r2, Mp)
    dp = _pad_rows(d2, Mp)
    h, y = pl.pallas_call(
        functools.partial(_add_rmsnorm_kernel, eps=eps),
        out_shape=(jax.ShapeDtypeStruct((Mp, D), r2.dtype),
                   jax.ShapeDtypeStruct((Mp, D), r2.dtype)),
        grid_spec=pltpu.PrefetchScalarGridSpec(
            num_scalar_prefetch=0,
            grid=(Mp // tm,),
            in_specs=[pl.BlockSpec((tm, D), lambda i: (i, 0)),
                      pl.BlockSpec((tm, D), lambda i: (i, 0)),
                      pl.BlockSpec((1, D), lambda i: (0, 0))],
            out_specs=(pl.BlockSpec((tm, D), lambda i: (i, 0)),
                       pl.BlockSpec((tm, D), lambda i: (i, 0))),
        ),
        compiler_params=pltpu.CompilerParams(dimension_semantics=("parallel",)),
    )(rp, dp, w.reshape(1, D))
    return h[:M], y[:M]


# ----------------- gated (SwiGLU) MLP + residual, I-tiled ---------------------

def _gated_mlp_kernel(y_ref, res_ref, wg_ref, wu_ref, wd_ref, o_ref, acc_ref, *, act):
    j = pl.program_id(1)

    @pl.when(j == 0)
    def _():
        acc_ref[...] = jnp.zeros_like(acc_ref)

    y = y_ref[...]
    g = jnp.dot(y, wg_ref[...], preferred_element_type=jnp.float32)
    u = jnp.dot(y, wu_ref[...], preferred_element_type=jnp.float32)
    a = _ACT2FN[act](g) * u                      # activation math in f32, once per element
    acc_ref[...] += jnp.dot(a.astype(wd_ref.dtype), wd_ref[...],
                            preferred_element_type=jnp.float32)

    @pl.when(j == pl.num_programs(1) - 1)
    def _():
        o_ref[...] = (acc_ref[...] + res_ref[...].astype(jnp.float32)).astype(o_ref.dtype)


def gated_mlp_residual(y2, res2, wg, wu, wd, *, act="silu", tile_m=256,
                       tile_i=2048, vmem_limit_bytes=64 * 1024 * 1024):
    """out = res + down_proj( act(y @ wg) * (y @ wu) ).  y2, res2: [M, D]."""
    M, D = y2.shape
    I = wg.shape[1]
    tm = _pick_tile_m(M, tile_m)
    ti = _pick_tile_i(I, tile_i)
    Mp = _round_up(M, tm)
    yp = _pad_rows(y2, Mp)
    rp = _pad_rows(res2, Mp)

    act_bytes = jnp.dtype(y2.dtype).itemsize
    w_bytes = jnp.dtype(wg.dtype).itemsize
    cost = pl.CostEstimate(
        flops=6 * Mp * D * I,                 # 3 matmuls, 2*M*D*I each
        transcendentals=Mp * I,               # sigmoid/tanh on the gate slab
        bytes_accessed=3 * Mp * D * act_bytes + 3 * D * I * w_bytes,
    )

    out = pl.pallas_call(
        functools.partial(_gated_mlp_kernel, act=act),
        out_shape=jax.ShapeDtypeStruct((Mp, D), res2.dtype),
        grid_spec=pltpu.PrefetchScalarGridSpec(
            num_scalar_prefetch=0,
            grid=(Mp // tm, I // ti),          # reduction (I) axis last
            in_specs=[
                pl.BlockSpec((tm, D), lambda i, j: (i, 0)),   # y tile (block-invariant in j)
                pl.BlockSpec((tm, D), lambda i, j: (i, 0)),   # residual tile
                pl.BlockSpec((D, ti), lambda i, j: (0, j)),   # gate_proj weight stream
                pl.BlockSpec((D, ti), lambda i, j: (0, j)),   # up_proj weight stream
                pl.BlockSpec((ti, D), lambda i, j: (j, 0)),   # down_proj weight stream
            ],
            out_specs=pl.BlockSpec((tm, D), lambda i, j: (i, 0)),
            scratch_shapes=[pltpu.VMEM((tm, D), jnp.float32)],  # f32 accumulator
        ),
        compiler_params=pltpu.CompilerParams(
            dimension_semantics=("parallel", "arbitrary"),
            vmem_limit_bytes=vmem_limit_bytes,
        ),
        cost_estimate=cost,
    )(yp, rp, wg, wu, wd)
    return out[:M]


# --------------------------- full decoder layer -------------------------------

def mamba_decoder_layer(hidden_states, ln1_w, ln2_w, wg, wu, wd, *, mamba_fn,
                        eps=1e-5, hidden_act="silu", tile_m=256, tile_i=2048):
    """MambaDecoderLayer.forward: norm -> mixer -> +res -> norm -> MLP -> +res."""
    B, S, D = hidden_states.shape
    M = B * S
    x2 = hidden_states.reshape(M, D)

    # residual = hidden_states; hidden_states = input_layernorm(hidden_states)
    y1 = rmsnorm(x2, ln1_w, eps=eps, tile_m=tile_m)

    # hidden_states = self.mamba(hidden_states, inference_params)
    # TODO(synk): the Mamba2 mixer's source (conv1d + SSD scan + gated norm +
    # out_proj) is not in the provided spec; it is invoked as an external
    # callable here instead of being faked in-kernel.
    mixed = mamba_fn(y1.reshape(B, S, D)).reshape(M, D)

    # hidden_states = residual + hidden_states; residual = hidden_states
    # hidden_states = post_attention_layernorm(hidden_states)   (fused kernel)
    h, y2 = add_rmsnorm(x2, mixed, ln2_w, eps=eps, tile_m=tile_m)

    # hidden_states = residual + self.mlp(hidden_states)         (fused kernel)
    out2 = gated_mlp_residual(y2, h, wg, wu, wd, act=hidden_act,
                              tile_m=tile_m, tile_i=tile_i)
    return out2.reshape(B, S, D)


# ------------------------------ pure-JAX reference ----------------------------

def _layer_ref(x, ln1_w, ln2_w, wg, wu, wd, mamba_fn, eps, act="silu"):
    def rms(h, w):
        hf = h.astype(jnp.float32)
        inv = jax.lax.rsqrt(jnp.mean(hf * hf, axis=-1, keepdims=True) + eps)
        return (hf * inv * w.astype(jnp.float32)).astype(h.dtype)

    residual = x
    h = rms(x, ln1_w)
    h = mamba_fn(h)
    h = residual + h
    residual = h
    y = rms(h, ln2_w).astype(jnp.float32)
    g = jnp.einsum("bsd,di->bsi", y, wg.astype(jnp.float32))
    u = jnp.einsum("bsd,di->bsi", y, wu.astype(jnp.float32))
    mlp = jnp.einsum("bsi,id->bsd", _ACT2FN[act](g) * u, wd.astype(jnp.float32))
    return (residual.astype(jnp.float32) + mlp).astype(x.dtype)


if __name__ == "__main__":
    # Small shapes consistent with the module: batch=2, seq=9 (deliberately not
    # a multiple of the token tile, to exercise padding), d_model=32,
    # intermediate_size=256 (so the I axis really gets tiled).
    B, S, D, I = 2, 9, 32, 256
    eps = 1e-5
    key = jax.random.PRNGKey(0)
    kx, k1, k2, k3, k4, k5 = jax.random.split(key, 6)

    x = jax.random.normal(kx, (B, S, D), dtype=jnp.float32)
    ln1_w = 1.0 + 0.1 * jax.random.normal(k1, (D,), dtype=jnp.float32)
    ln2_w = 1.0 + 0.1 * jax.random.normal(k2, (D,), dtype=jnp.float32)
    # PyTorch nn.Linear stores weight as [out, in]; we keep the pre-transposed
    # [in, out] layout so matmuls are lane-dense on the MXU.
    wg = jax.random.normal(k3, (D, I), dtype=jnp.float32) / math.sqrt(D)
    wu = jax.random.normal(k4, (D, I), dtype=jnp.float32) / math.sqrt(D)
    wd = jax.random.normal(k5, (I, D), dtype=jnp.float32) / math.sqrt(I)

    # TODO(synk): Mamba2 mixer not defined in the provided module source; plug
    # the real sequence mixer here.
    mamba_fn = lambda h: h

    # f32 run (tight check); small tiles so the grid has multiple steps along
    # both the token ("parallel") axis and the I ("arbitrary") reduction axis.
    out = mamba_decoder_layer(x, ln1_w, ln2_w, wg, wu, wd, mamba_fn=mamba_fn,
                              eps=eps, hidden_act="silu", tile_m=16, tile_i=128)
    out = jax.block_until_ready(out)
    ref = _layer_ref(x, ln1_w, ln2_w, wg, wu, wd, mamba_fn, eps, act="silu")
    assert out.shape == (B, S, D)
    assert jnp.allclose(out, ref, atol=2e-4, rtol=2e-4), "f32 mismatch vs reference"

    # bf16 weights/activations run (perf configuration: bf16 MXU inputs, f32 accum).
    to_bf16 = lambda a: a.astype(jnp.bfloat16)
    out_bf16 = mamba_decoder_layer(
        to_bf16(x), to_bf16(ln1_w), to_bf16(ln2_w), to_bf16(wg), to_bf16(wu),
        to_bf16(wd), mamba_fn=mamba_fn, eps=eps, hidden_act="silu",
        tile_m=16, tile_i=128)
    out_bf16 = jax.block_until_ready(out_bf16)
    assert out_bf16.shape == (B, S, D)
    assert jnp.allclose(out_bf16.astype(jnp.float32), ref, atol=0.35, rtol=0.1), \
        "bf16 run diverged beyond quantization tolerance"

    print("KERNEL_OK")
</pallas_src>

<mosaic_0001>
module attributes {stable_mosaic.version = 11 : i64} {
  func.func @_rmsnorm_kernel(%arg0: i32, %arg1: memref<16x32xf32, #tpu.memory_space<vmem>>, %arg2: memref<1x32xf32, #tpu.memory_space<vmem>>, %arg3: memref<16x32xf32, #tpu.memory_space<vmem>>) attributes {dimension_semantics = [#tpu.dimension_semantics<parallel>], iteration_bounds = array<i64: 2>, scalar_prefetch = 0 : i64, scratch_operands = 0 : i64, tpu.core_type = #tpu.core_type<tc>, window_params = [{transform_indices = @transform_0, window_bounds = array<i64: 16, 32>}, {pipeline_mode = #tpu.pipeline_mode<synchronous>, transform_indices = @transform_1, window_bounds = array<i64: 1, 32>}, {transform_indices = @transform_2, window_bounds = array<i64: 16, 32>}]} {
    %c0 = arith.constant 0 : index
    %c0_0 = arith.constant 0 : index
    %0 = vector.load %arg1[%c0, %c0_0] : memref<16x32xf32, #tpu.memory_space<vmem>>, vector<16x32xf32>
    %1 = arith.mulf %0, %0 : vector<16x32xf32>
    %cst = arith.constant dense<0.000000e+00> : vector<16xf32>
    %2 = vector.multi_reduction <add>, %1, %cst [1] : vector<16x32xf32> to vector<16xf32>
    %3 = vector.shape_cast %2 : vector<16xf32> to vector<16x1xf32>
    %cst_1 = arith.constant 3.200000e+01 : f32
    %4 = vector.broadcast %cst_1 : f32 to vector<16x1xf32>
    %5 = arith.divf %3, %4 : vector<16x1xf32>
    %cst_2 = arith.constant 9.99999974E-6 : f32
    %6 = vector.broadcast %cst_2 : f32 to vector<16x1xf32>
    %7 = arith.addf %5, %6 : vector<16x1xf32>
    %8 = math.rsqrt %7 : vector<16x1xf32>
    %9 = vector.broadcast %8 : vector<16x1xf32> to vector<16x32xf32>
    %10 = arith.mulf %0, %9 : vector<16x32xf32>
    %c0_3 = arith.constant 0 : index
    %c0_4 = arith.constant 0 : index
    %11 = vector.load %arg2[%c0_3, %c0_4] : memref<1x32xf32, #tpu.memory_space<vmem>>, vector<1x32xf32>
    %12 = vector.broadcast %11 : vector<1x32xf32> to vector<16x32xf32>
    %13 = arith.mulf %10, %12 : vector<16x32xf32>
    %c0_5 = arith.constant 0 : index
    %c0_6 = arith.constant 0 : index
    %14 = vector.load %arg3[%c0_5, %c0_6] : memref<16x32xf32, #tpu.memory_space<vmem>>, vector<16x32xf32>
    tpu.vector_store %arg3[%c0_5, %c0_6], %13 {strides = array<i32>} : memref<16x32xf32, #tpu.memory_space<vmem>>, vector<16x32xf32>,
    return
  }
  func.func @transform_0(%arg0: i32) -> (i32, i32) {
    %c0_i32 = arith.constant 0 : i32
    %c0_i32_0 = arith.constant 0 : i32
    return %arg0, %c0_i32 : i32, i32
  }
  func.func @transform_1(%arg0: i32) -> (i32, i32) {
    %c0_i32 = arith.constant 0 : i32
    %c0_i32_0 = arith.constant 0 : i32
    %c0_i32_1 = arith.constant 0 : i32
    return %c0_i32, %c0_i32_0 : i32, i32
  }
  func.func @transform_2(%arg0: i32) -> (i32, i32) {
    %c0_i32 = arith.constant 0 : i32
    %c0_i32_0 = arith.constant 0 : i32
    return %arg0, %c0_i32 : i32, i32
  }
}

</mosaic_0001>

<bundles_post_ra>
// kernel: tpu_custom_call.1
= control target key start
LH: loop header
LB: loop body
LE: loop exit
PB: predicated region body
PF: predicated region fallthrough
CT: control target
= control target key end

     0   :  { %7 = vsyncpa [#allocation3], 0  ;;  %s722_s0 = inlined_call_operand.hbm [shape: f32[32,32], index: 0, kind: input, shape index: {}]   ;;  %s723_s1 = inlined_call_operand.hbm [shape: f32[1,32], index: 1, kind: input, shape index: {}]   ;;  %s724_s2 = inlined_call_operand.hbm [shape: f32[32,32], index: 2, kind: output, shape index: {}]  }
   0x1   :  { %9 = vsyncpa [#allocation3 + $0x1], 0 }
   0x2   :  { %10 = vsyncpa [#allocation6], 0 }
   0x3   :  { %11 = vsyncpa [#allocation4], 0 }
   0x4   :  { %13 = vsyncpa [#allocation4 + $0x1], 0  ;;  %s572_s9 = smov 0   ;;  %s574_s10 = smov 0  }
   0x5   :  { %s576_s11 = smov 0   ;;  %s578_s12 = smov 0  }
   0x6 LB: > { %s593_s13 = sadd.s32 4294967295, %s549_s12   ;;  %s332_s14 = sadd.s32 4294967294, %s549_s12   ;;  %s549_s12 = sphi %s578_s12, %s735_s12   ;;  %s545_s11 = sphi %s576_s11, %s734_s11   ;;  %s541_s10 = sphi %s574_s10, %s733_s10   ;;  %s537_s9 = sphi %s572_s9, %s732_s9  }
   0x7   : > { %s597_s15 = sadd.s32 1, %s549_s12   ;;  %s26_s16 = sadd.s32 1, %s545_s11 }
   0x8   : > { %s23_s17 = ssub.s32 %s549_s12, %s597_s15  ;;  %p33_p0 = scmp.ne.s32.totalorder %s545_s11, %s541_s10 }
   0x9   : > { %p24_p1 = scmp.eq.s32.totalorder %s23_s17, 0  ;;  %p34_p2 = scmp.eq.s32.totalorder %s549_s12, 0 }
   0xa   : > { %p39_p3 = scmp.ne.s32.totalorder %s541_s10, %s537_s9  ;;  %p40_p4 = scmp.eq.s32.totalorder %s593_s13, 0 }
   0xb   : > { %s609_s18 = scalar_select %p24_p1, %s545_s11, %s26_s16  }
   0xc   : > { %p611_p5 = por %p34_p2, %p33_p0  ;;  %p617_p6 = por %p40_p4, %p39_p3 }
   0xd   : > { %p84_p7 = scmp.eq.s32.totalorder %s593_s13, 1  ;;  %p90_p8 = scmp.eq.s32.totalorder %s332_s14, 1 }
   0xe   : > { %p333_p9 = scmp.ge.s32.totalorder %s549_s12, 1  ;;  %p97_p10 = scmp.lt.s32.totalorder %s549_s12, 3 }
   0xf   : > { %p624_p11 = por %p84_p7, %p33_p0  ;;  %p628_p12 = por %p90_p8, %p39_p3 }
  0x10   : > { %p632_p13 = pnand %p333_p9, %p97_p10  ;;  %s109_s26 = sshll.u32 %s723_s1, 4  ;;  %s110_s26 = int_to_ptr.hbm [resolvable:$true] %s109_s26 }
  0x11   : > { %s551_s27 = smov [#allocation5]   ;;  %p371_p3 = scmp.lt.s32.totalorder %s549_s12, 2 }
  0x12   : > { %p358_p1 = pneg %p632_p13  ;;  %s111_s28 = sshll.u32 %s551_s27, 4  ;;  %s112_s28 = int_to_ptr.vmem [resolvable:$true] %s111_s28 }
  0x13   : > { %s122_s29 = sand.u32 1, %s545_s11   ;;  %p648_p7 = pnand %p371_p3, %p611_p5 }
  0x14   : > { %p359_p2 = pnand %p358_p1, %p40_p4  ;;  %s336_s3 = sshll.u32 %s122_s29, 4 }
  0x15   : > { %s348_s4 = sshll.u32 %s549_s12, 4  ;;  %s126_s14 = scalar_lea.vmem [#allocation2], %s336_s3 }
  0x16   : > { %361 = dma.hbm_to_vmem [thread:$0]  (!%p359_p2), %s110_s26, 16, %s112_s28, [#allocation6]  }
  0x17   : > { %s131_s7 = scalar_lea.hbm %s722_s0, %s348_s4  ;;  %s134_s16 = sshll.u32 %s126_s14, 4  ;;  %s135_s16 = int_to_ptr.vmem [resolvable:$true] %s134_s16 }
  0x18   : > { %s132_s8 = sshll.u32 %s131_s7, 4  ;;  %s123_s17 = scalar_lea.sflag [#allocation3], %s122_s29  ;;  %s133_s8 = int_to_ptr.hbm [resolvable:$true] %s132_s8 }
  0x19   : > { %s449_s24 = sshra.s32 %s133_s8, 4  ;;  %p453_p8 = pneg %p648_p7  ;;  %s450_s24 = int_to_ptr.hbm [resolvable:$true] %s449_s24 }
  0x1a   : > { %s451_s19 = scalar_lea.hbm %s450_s24, 16  ;;  %s456_s27 = scalar_lea.hbm %s722_s0, 32 }
  0x1b   : > { %p452_p5 = scmp.ne.s32.totalorder %s450_s24, %s451_s19  ;;  %p457_p1 = scmp.lt.s32.totalorder %s450_s24, %s722_s0 }
  0x1c   : > { %p458_p2 = scmp.lt.s32.totalorder %s456_s27, %s451_s19 }
  0x1d   : > { %p454_p9 = pnand %p453_p8, %p452_p5 }
  0x1e   : > { %p459_p3 = por %p458_p2, %p457_p1 }
  0x1f   : > { %p455_p10 = pneg %p454_p9 }
  0x21   : > { %p460_p0 = pnand %p459_p3, %p455_p10 }
  0x23   : > { %463 = shalt.err (!%p460_p0)
}
  0x24   : > { %s552_s29 = smov 128   ;;  %s553_s3 = smov 8  }
  0x25   : > { %365 = dma.hbm_to_vmem [thread:$0]  (!%p648_p7), %s133_s8, 256, %s135_s16, %s123_s17, %s552_s29, %s552_s29, %s553_s3  }
  0x26   : > { %146 = sbr.rel (%p632_p13) target bundleno = 204 (0xcc), region = 28  ;;  %s669_s5 = sand.u32 (!%p632_p13), 1, %s541_s10  }
  0x27   : > { %s340_s6 = sshll.u32 (!%p632_p13), %s669_s5, 4  ;;  %s149_s7 = scalar_lea.sflag (!%p632_p13), [#allocation3], %s669_s5 }
  0x28   : > { %s152_s14 = scalar_lea.vmem (!%p632_p13), [#allocation2], %s340_s6 }
  0x2b   : > { %524 = dma.done.wait (%p617_p6), %s149_s7, 256  }
  0x2c   : > { %526 = vsyncadd (%p617_p6), %s149_s7, 4294967040 }
  0x2d   : > { %528 = dma.done.wait (%p40_p4), [#allocation6], 16  }
  0x2e   : > { %530 = vsyncadd (%p40_p4), [#allocation6], 4294967280  ;;  %v181_v0 = vld [vmem:[%s152_s14] sm:$0xff]  ;;  %vm185_vm0 = vcmask 261120   ;;  %v182_v2 = vld [vmem:[%s152_s14 + $0x8] sm:$0xff]  ;;  %v554_v6 = vmov 32.0  }
  0x2f   : > { %v183_v1 = vmul.f32 %v181_v0, %v181_v0  ;;  %v184_v4 = vmul.f32 %v182_v2, %v182_v2  ;;  %413 = vrcp.f32 %v554_v6  ;;  %v412_v27 = vld [vmem:[#allocation5] ss:$0 sm:$0xff]  ;;  %s349_s20 = sshll.u32 %s593_s13, 4  ;;  %s178_s16 = scalar_lea.vmem [#allocation7], %s340_s6 }
  0x30   : > { %s245_s8 = scalar_lea.hbm %s724_s2, %s349_s20  ;;  %s246_s17 = sshll.u32 %s178_s16, 4  ;;  %s247_s17 = int_to_ptr.vmem [resolvable:$true] %s246_s17 }
  0x31   : > { %v186_v3 = vsel %vm185_vm0, %v183_v1, 0.0  ;;  %v189_v5 = vsel %vm185_vm0, %v184_v4, 0.0  ;;  %s248_s24 = sshll.u32 %s245_s8, 4  ;;  %s234_s13 = scalar_lea.sflag [#allocation4], %s669_s5  ;;  %s249_s24 = int_to_ptr.hbm [resolvable:$true] %s248_s24 }
  0x32   : > { %187 = vadd.xlane.f32.xlu0 %v186_v3  ;;  %s493_s19 = sshra.s32 %s249_s24, 4  ;;  %s499_s28 = scalar_lea.hbm %s724_s2, 32  ;;  %s494_s19 = int_to_ptr.hbm [resolvable:$true] %s493_s19 }
  0x33   : > { %s495_s25 = scalar_lea.hbm %s494_s19, 16  ;;  %p500_p0 = scmp.lt.s32.totalorder %s494_s19, %s724_s2 }
  0x34   : > { %p496_p4 = scmp.ne.s32.totalorder %s494_s19, %s495_s25  ;;  %p501_p7 = scmp.lt.s32.totalorder %s499_s28, %s495_s25 }
  0x35   : > { %v414_v7 = vpop.eup %413 }
  0x36   : > { %v193_v8 = vmul.f32 32.0, %v414_v7  ;;  %vm197_vm1 = vweird.f32 %v414_v7  ;;  %p497_p6 = pnand %p496_p4, %p624_p11  ;;  %p502_p5 = por %p501_p7, %p500_p0 }
  0x38   : > { %v194_v9 = vsub.f32 1.0, %v193_v8  ;;  %p498_p13 = pneg %p497_p6 }
  0x3a   : > { %190 = vadd.xlane.f32.xlu0 %v189_v5  ;;  %v195_v10 = vmul.f32 %v414_v7, %v194_v9  ;;  %p503_p8 = pnand %p502_p5, %p498_p13 }
  0x3c   : > { %v196_v11 = vadd.f32 %v414_v7, %v195_v10 }
  0x3e   : > { %v198_v12 = vsel %vm197_vm1, %v414_v7, %v196_v11 }
  0xa5   : > { %v188_v13 = vpop.xlane.xlu0 %187 }
  0xa6   : > { %v199_v14 = vmul.f32 %v198_v12, %v188_v13 }
  0xa8   : > { %v201_v15 = vadd.f32 1e-05, %v199_v14 }
  0xaa   : > { %415 = vrsqrt.f32 %v201_v15  ;;  %vm209_vm3 = vweird.f32 %v201_v15 }
  0xad   : > { %v191_v16 = vpop.xlane.xlu0 %190 }
  0xae   : > { %v200_v17 = vmul.f32 %v198_v12, %v191_v16 }
  0xb0   : > { %v416_v18 = vpop.eup %415  ;;  %v202_v19 = vadd.f32 1e-05, %v200_v17 }
  0xb1   : > { %v204_v20 = vmul.f32 %v416_v18, %v201_v15  ;;  %vm210_vm2 = vweird.f32 %v416_v18 }
  0xb2   : > { %417 = vrsqrt.f32 %v202_v19  ;;  %vm211_vm4 = vmor %vm209_vm3, %vm210_vm2  ;;  %vm219_vm6 = vweird.f32 %v202_v19 }
  0xb3   : > { %v205_v21 = vmul.f32 %v416_v18, %v204_v20 }
  0xb5   : > { %v206_v22 = vmul.f32 0.5, %v205_v21 }
  0xb7   : > { %v207_v23 = vsub.f32 1.5, %v206_v22 }
  0xb8   : > { %v418_v24 = vpop.eup %417 }
  0xb9   : > { %v208_v25 = vmul.f32 %v416_v18, %v207_v23  ;;  %v214_v26 = vmul.f32 %v418_v24, %v202_v19  ;;  %vm220_vm5 = vweird.f32 %v418_v24 }
  0xba   : > { %vm221_vm7 = vmor %vm219_vm6, %vm220_vm5 }
  0xbb   : > { %v212_v28 = vsel %vm211_vm4, %v416_v18, %v208_v25  ;;  %v215_v29 = vmul.f32 %v418_v24, %v214_v26 }
  0xbc   : > { %v223_v30 = vmul.f32 %v212_v28, %v181_v0 }
  0xbd   : > { %v216_v31 = vmul.f32 0.5, %v215_v29 }
  0xbe   : > { %v229_v32 = vmul.f32 %v412_v27, %v223_v30 }
  0xbf   : > { %v217_v33 = vsub.f32 1.5, %v216_v31 }
  0xc0   : > { %231 = vst.msk [vmem:[%s178_s16] sm:$0xff] %vm185_vm0, %v229_v32 }
  0xc1   : > { %v218_v34 = vmul.f32 %v418_v24, %v217_v33 }
  0xc3   : > { %v222_v35 = vsel %vm221_vm7, %v418_v24, %v218_v34 }
  0xc4   : > { %v224_v36 = vmul.f32 %v222_v35, %v182_v2 }
  0xc6   : > { %v230_v37 = vmul.f32 %v412_v27, %v224_v36 }
  0xc8   : > { %232 = vst.msk [vmem:[%s178_s16 + $0x8] sm:$0xff] %vm185_vm0, %v230_v37 }
  0xc9   : > { %506 = shalt.err (!%p503_p8)
}
  0xca   : > { %s555_s3 = smov 128   ;;  %s556_s5 = smov 8  }
  0xcb   : > { %356 = dma.vmem_to_hbm [thread:$0]  (%p624_p11), %s247_s17, 256, %s249_s24, %s234_s13, %s555_s3, %s555_s3, %s556_s5  }
  0xcc PF: > { %s263_s6 = sand.u32 1, %s537_s9   ;;  %p731_p9 = scmp.ge.s32.totalorder %s549_s12, 2 }
  0xcd   : > { %s264_s7 = scalar_lea.sflag [#allocation4], %s263_s6 }
  0xce   : > { %p367_p10 = pnand %p731_p9, %p628_p12 }
  0xd0   : > { %p368_p1 = pneg %p367_p10 }
  0xd2   : > { %532 = dma.done.wait (%p368_p1), %s264_s7, 256  }
  0xd3   : > { %534 = vsyncadd (%p368_p1), %s264_s7, 4294967040  ;;  %p16_p2 = scmp.ge.s32.totalorder %s597_s15, 4   ;;  %s732_s9 = smov %s541_s10 }
  0xd4   : > { %s733_s10 = smov %s545_s11  ;;  %s734_s11 = smov %s609_s18 }
  0xd5   : > { %s735_s12 = smov %s597_s15  ;;  %18 = sbr.rel (!%p16_p2) target bundleno = 6 (0x6), region = 77 }
  0xda   :  { %270 = vsyncpa [#allocation3], 1 }
  0xdb   :  { %272 = vsyncpa [#allocation3 + $0x1], 1 }
  0xdc   :  { %273 = vsyncpa [#allocation6], 1 }
  0xdd   :  { %274 = vsyncpa [#allocation4], 1 }
  0xde   :  { %276 = vsyncpa [#allocation4 + $0x1], 1 }

</bundles_post_ra>
